<compile_context>
chip_gen: v5e
topology: v5e:2x2
jax: 0.10.0
libtpu: 0.0.40
codegen_flags: <defaults>
</compile_context>

<pallas_src>
import jax
import jax.numpy as jnp
from jax.experimental import pallas as pl
from jax.experimental.pallas import tpu as pltpu


def _round_up(x, m):
    return ((x + m - 1) // m) * m


def _cdiv(a, b):
    return (a + b - 1) // b


def _vmem_budget_and_is_small_vmem():
    """(scoped-VMEM budget, is_v7x_like) derived from the attached chip."""
    try:
        cap = int(pltpu.get_tpu_info().vmem_capacity_bytes)
    except Exception:
        cap = 64 << 20  # conservative fallback: assume v7x-class per-core VMEM
    if cap >= (100 << 20):        # v5e / v6e: 128 MiB physical VMEM
        return 96 << 20, False
    return 48 << 20, True         # v7x: 64 MiB per TensorCore


def _choose_tiles(U, I, Fp, emb_bytes, out_bytes, vmem_budget, tu_target,
                  ti_target, ensure_two_blocks):
    """Pick (TU, TI, Up, Ip): VMEM-fitting, low-padding, megacore-friendly."""
    U8 = _round_up(U, 8)
    I128 = _round_up(I, 128)
    TU = min(_round_up(tu_target, 8), U8)
    TI = min(_round_up(ti_target, 128), I128)

    def buffered_bytes(tu_, ti_):
        # BlockSpec double-buffers every operand and the output tile.
        return 2 * (tu_ * Fp * emb_bytes + Fp * ti_ * emb_bytes
                    + tu_ * 4 + ti_ * 4 + tu_ * ti_ * out_bytes)

    # Shrink until the double-buffered footprint fits.  Prefer shrinking TI:
    # item-matrix re-read traffic scales with the number of *user* tiles.
    while buffered_bytes(TU, TI) > vmem_budget:
        if TI > 128:
            TI = max(128, _round_up(TI // 2, 128))
        elif TU > 8:
            TU = max(8, _round_up(TU // 2, 8))
        else:
            break

    # Re-balance: keep the tile counts but shrink each tile to just cover the
    # rounded extents, so padding written to the (Up, Ip) f32 output is minimal
    # (at most 7 rows / 127 cols total instead of up to TU-1 / TI-1).
    n_u = _cdiv(U8, TU)
    TU = _round_up(_cdiv(U8, n_u), 8)
    n_i = _cdiv(I128, TI)
    TI = _round_up(_cdiv(I128, n_i), 128)

    # v7x megacore: make sure >= 2 grid blocks exist when the problem allows it
    # (a 1x1 grid would leave one TensorCore idle).  Prefer splitting the item
    # axis (does not increase item-matrix re-reads).
    if ensure_two_blocks and n_u * n_i == 1:
        if I128 >= 256:
            n_i = 2
            TI = _round_up(_cdiv(I128, 2), 128)
        elif U8 >= 16:
            n_u = 2
            TU = _round_up(_cdiv(U8, 2), 8)

    return TU, TI, n_u * TU, n_i * TI


def _mf_kernel(u_ref, itT_ref, ub_ref, ib_ref, pred_ref):
    # u_ref:   (TU, Fp)  user-embedding tile (compute dtype, e.g. bf16)
    # itT_ref: (Fp, TI)  pre-transposed item-embedding tile (compute dtype)
    # ub_ref:  (TU, 1)   gathered user bias (f32)
    # ib_ref:  (1, TI)   gathered item bias with the scalar average folded in (f32)
    scores = jnp.dot(u_ref[...], itT_ref[...],
                     preferred_element_type=jnp.float32)          # MXU, f32 acc
    pred_ref[...] = (scores + ub_ref[...] + ib_ref[...]).astype(pred_ref.dtype)


def biased_mf_forward(params, user_idx, item_idx, average, *,
                      tu=1024, ti=None,
                      compute_dtype=jnp.bfloat16, out_dtype=jnp.float32):
    """Replicates biasedMF.forward; returns (predict, user_emb, item_emb)."""
    embed_user = params["embed_user"]
    embed_item = params["embed_item"]
    user_bias = params["user_bias"]
    item_bias = params["item_bias"]

    # Glue: embedding / bias gathers (the gathered embeddings are returned, so
    # they must exist in HBM regardless; they fuse with the pad/cast below).
    user_emb = embed_user[user_idx]                              # (U, F) f32
    item_emb = embed_item[item_idx]                              # (I, F) f32
    ub = user_bias[user_idx].astype(jnp.float32)                 # (U,)
    ib = item_bias[item_idx].astype(jnp.float32) + jnp.float32(average)   # (I,)

    U, F = user_emb.shape
    I = item_emb.shape[0]

    emb_bytes = jnp.dtype(compute_dtype).itemsize
    out_bytes = jnp.dtype(out_dtype).itemsize

    # Contraction dim: pad only to the sublane-packing granularity of the
    # compute dtype (bf16 -> 16, f32 -> 8).  The F block spans the full array
    # dim, so the 128-lane divisibility rule does not apply.
    Fp = _round_up(F, max(8, 32 // emb_bytes))

    vmem_budget, is_small_vmem = _vmem_budget_and_is_small_vmem()
    # Bigger item tiles on the 128-MiB-VMEM parts (v5e/v6e), per review.
    ti_target = ti if ti is not None else (2048 if is_small_vmem else 4096)

    TU, TI, Up, Ip = _choose_tiles(U, I, Fp, emb_bytes, out_bytes, vmem_budget,
                                   tu, ti_target,
                                   ensure_two_blocks=is_small_vmem)

    # Zero-pad + cast matmul operands; item side pre-transposed to (Fp, Ip).
    u_p = jnp.zeros((Up, Fp), compute_dtype).at[:U, :F].set(
        user_emb.astype(compute_dtype))
    itT_p = jnp.zeros((Fp, Ip), compute_dtype).at[:F, :I].set(
        item_emb.astype(compute_dtype).T)
    ub_p = jnp.zeros((Up, 1), jnp.float32).at[:U, 0].set(ub)
    ib_p = jnp.zeros((1, Ip), jnp.float32).at[0, :I].set(ib)

    grid = (Up // TU, Ip // TI)

    cost = pl.CostEstimate(
        flops=2 * Up * Ip * Fp,
        transcendentals=0,
        bytes_accessed=(Up * Fp * emb_bytes            # user tiles, read once
                        + grid[0] * Fp * Ip * emb_bytes  # item tiles, re-streamed
                        + Up * Ip * out_bytes            # output write
                        + Up * 4 + Ip * 4),              # bias rows/cols
    )

    predict_p = pl.pallas_call(
        _mf_kernel,
        out_shape=jax.ShapeDtypeStruct((Up, Ip), out_dtype),
        grid=grid,
        in_specs=[
            pl.BlockSpec((TU, Fp), lambda i, j: (i, 0)),   # user-embedding tile
            pl.BlockSpec((Fp, TI), lambda i, j: (0, j)),   # item-embedding^T tile
            pl.BlockSpec((TU, 1), lambda i, j: (i, 0)),    # user bias column
            pl.BlockSpec((1, TI), lambda i, j: (0, j)),    # item bias (+avg) row
        ],
        out_specs=pl.BlockSpec((TU, TI), lambda i, j: (i, j)),
        compiler_params=pltpu.CompilerParams(
            dimension_semantics=("parallel", "parallel"),  # megacore sharding
            vmem_limit_bytes=int(vmem_budget),
        ),
        cost_estimate=cost,
    )(u_p, itT_p, ub_p, ib_p)

    predict = predict_p[:U, :I]
    return predict, user_emb, item_emb


def init_params(key, usernum, itemnum, factor_num):
    k_u, k_i = jax.random.split(key)
    return {
        "embed_user": 0.01 * jax.random.normal(k_u, (usernum, factor_num), jnp.float32),
        "embed_item": 0.01 * jax.random.normal(k_i, (itemnum, factor_num), jnp.float32),
        "user_bias": jnp.zeros((usernum,), jnp.float32),
        "item_bias": jnp.zeros((itemnum,), jnp.float32),
    }


def _reference(params, user_idx, item_idx, average):
    ue = params["embed_user"][user_idx]
    ie = params["embed_item"][item_idx]
    return (ue @ ie.T + average
            + params["user_bias"][user_idx][:, None]
            + params["item_bias"][item_idx][None, :])


if __name__ == "__main__":
    usernum, itemnum, factor_num = 64, 512, 32

    key = jax.random.PRNGKey(0)
    k_params, k_user, k_item, k_user2, k_item2 = jax.random.split(key, 5)
    params = init_params(k_params, usernum, itemnum, factor_num)
    average = 3.5  # global average rating

    # --- Test 1: small batch, single-tile path (default tile targets). ---
    U, I = 8, 16
    user_idx = jax.random.randint(k_user, (U,), 0, usernum)
    item_idx = jax.random.randint(k_item, (I,), 0, itemnum)
    predict, user_emb, item_emb = biased_mf_forward(params, user_idx, item_idx, average)
    jax.block_until_ready((predict, user_emb, item_emb))
    ref = _reference(params, user_idx, item_idx, average)
    assert predict.shape == (U, I)
    assert jnp.allclose(predict, ref, atol=1e-3), "mismatch vs reference (test 1)"

    # --- Test 2: multi-tile grid with non-divisible U/I (exercises index_maps,
    #     padding and the final [:U, :I] slice) using small explicit tiles. ---
    U2, I2 = 20, 300
    user_idx2 = jax.random.randint(k_user2, (U2,), 0, usernum)
    item_idx2 = jax.random.randint(k_item2, (I2,), 0, itemnum)
    predict2, _, _ = biased_mf_forward(params, user_idx2, item_idx2, average,
                                       tu=16, ti=128)
    jax.block_until_ready(predict2)
    ref2 = _reference(params, user_idx2, item_idx2, average)
    assert predict2.shape == (U2, I2)
    assert jnp.allclose(predict2, ref2, atol=1e-3), "mismatch vs reference (test 2)"

    print("KERNEL_OK")
</pallas_src>

<mosaic_0001>
module attributes {stable_mosaic.version = 11 : i64} {
  func.func @_mf_kernel(%arg0: i32, %arg1: i32, %arg2: memref<8x32xbf16, #tpu.memory_space<vmem>>, %arg3: memref<32x128xbf16, #tpu.memory_space<vmem>>, %arg4: memref<8x1xf32, #tpu.memory_space<vmem>>, %arg5: memref<1x128xf32, #tpu.memory_space<vmem>>, %arg6: memref<8x128xf32, #tpu.memory_space<vmem>>) attributes {dimension_semantics = [#tpu.dimension_semantics<parallel>, #tpu.dimension_semantics<parallel>], iteration_bounds = array<i64: 1, 1>, scalar_prefetch = 0 : i64, scratch_operands = 0 : i64, tpu.core_type = #tpu.core_type<tc>, window_params = [{transform_indices = @transform_0, window_bounds = array<i64: 8, 32>}, {transform_indices = @transform_1, window_bounds = array<i64: 32, 128>}, {transform_indices = @transform_2, window_bounds = array<i64: 8, 1>}, {transform_indices = @transform_3, window_bounds = array<i64: 1, 128>}, {transform_indices = @transform_4, window_bounds = array<i64: 8, 128>}]} {
    %c0 = arith.constant 0 : index
    %c0_0 = arith.constant 0 : index
    %0 = vector.load %arg2[%c0, %c0_0] : memref<8x32xbf16, #tpu.memory_space<vmem>>, vector<8x32xbf16>
    %c0_1 = arith.constant 0 : index
    %c0_2 = arith.constant 0 : index
    %1 = vector.load %arg3[%c0_1, %c0_2] : memref<32x128xbf16, #tpu.memory_space<vmem>>, vector<32x128xbf16>
    %cst = arith.constant dense<0.000000e+00> : vector<8x128xf32>
    %2 = tpu.matmul %0, %1, %cst {dimension_numbers = #tpu.dot_dimension_numbers<[1], [0], [0], [1], [0, 0, 1, 1], [], []>} : vector<8x32xbf16>, vector<32x128xbf16>, vector<8x128xf32> -> vector<8x128xf32>
    %c0_3 = arith.constant 0 : index
    %c0_4 = arith.constant 0 : index
    %3 = vector.load %arg4[%c0_3, %c0_4] : memref<8x1xf32, #tpu.memory_space<vmem>>, vector<8x1xf32>
    %4 = vector.broadcast %3 : vector<8x1xf32> to vector<8x128xf32>
    %5 = arith.addf %2, %4 : vector<8x128xf32>
    %c0_5 = arith.constant 0 : index
    %c0_6 = arith.constant 0 : index
    %6 = vector.load %arg5[%c0_5, %c0_6] : memref<1x128xf32, #tpu.memory_space<vmem>>, vector<1x128xf32>
    %7 = vector.broadcast %6 : vector<1x128xf32> to vector<8x128xf32>
    %8 = arith.addf %5, %7 : vector<8x128xf32>
    %c0_7 = arith.constant 0 : index
    %c0_8 = arith.constant 0 : index
    %9 = vector.load %arg6[%c0_7, %c0_8] : memref<8x128xf32, #tpu.memory_space<vmem>>, vector<8x128xf32>
    tpu.vector_store %arg6[%c0_7, %c0_8], %8 {strides = array<i32>} : memref<8x128xf32, #tpu.memory_space<vmem>>, vector<8x128xf32>,
    return
  }
  func.func @transform_0(%arg0: i32, %arg1: i32) -> (i32, i32) {
    %c0_i32 = arith.constant 0 : i32
    %c0_i32_0 = arith.constant 0 : i32
    return %arg0, %c0_i32 : i32, i32
  }
  func.func @transform_1(%arg0: i32, %arg1: i32) -> (i32, i32) {
    %c0_i32 = arith.constant 0 : i32
    %c0_i32_0 = arith.constant 0 : i32
    return %c0_i32, %arg1 : i32, i32
  }
  func.func @transform_2(%arg0: i32, %arg1: i32) -> (i32, i32) {
    %c0_i32 = arith.constant 0 : i32
    %c0_i32_0 = arith.constant 0 : i32
    return %arg0, %c0_i32 : i32, i32
  }
  func.func @transform_3(%arg0: i32, %arg1: i32) -> (i32, i32) {
    %c0_i32 = arith.constant 0 : i32
    %c0_i32_0 = arith.constant 0 : i32
    return %c0_i32, %arg1 : i32, i32
  }
  func.func @transform_4(%arg0: i32, %arg1: i32) -> (i32, i32) {
    %c0_i32 = arith.constant 0 : i32
    return %arg0, %arg1 : i32, i32
  }
}

</mosaic_0001>

<bundles_post_ra>
// kernel: tpu_custom_call.1
= control target key start
LH: loop header
LB: loop body
LE: loop exit
PB: predicated region body
PF: predicated region fallthrough
CT: control target
= control target key end

     0   :  { %9 = vsyncpa [#allocation3], 0  ;;  %s213_s0 = inlined_call_operand.vmem [shape: bf16[8,32], index: 0, kind: input, shape index: {}]   ;;  %s214_s1 = inlined_call_operand.hbm [shape: bf16[32,128], index: 1, kind: input, shape index: {}]   ;;  %s215_s2 = inlined_call_operand.vmem [shape: f32[8,1], index: 2, kind: input, shape index: {}]   ;;  %s216_s3 = inlined_call_operand.vmem [shape: f32[1,128], index: 3, kind: input, shape index: {}]   ;;  %s217_s4 = inlined_call_operand.hbm [shape: f32[8,128], index: 4, kind: output, shape index: {}]  }
   0x1   :  { %10 = vsyncpa [#allocation4], 0  ;;  %s17_s17 = sshll.u32 %s214_s1, 4  ;;  %s168_s18 = smov [#allocation2]   ;;  %s18_s17 = int_to_ptr.hbm [resolvable:$true] %s17_s17 }
   0x2   :  { %s19_s19 = sshll.u32 %s168_s18, 4  ;;  %s169_s20 = smov 64   ;;  %s20_s19 = int_to_ptr.vmem [resolvable:$true] %s19_s19 }
   0x3   :  { %s170_s21 = smov 4  }
   0x4   :  { %25 = dma.hbm_to_vmem [thread:$0]  %s18_s17, 256, %s20_s19, [#allocation3], %s169_s20, %s169_s20, %s170_s21  }
   0x5   :  { %164 = dma.done.wait [#allocation3], 256  }
   0x6   :  { %165 = vsyncadd [#allocation3], 4294967040  ;;  %v171_v0 = vmov 0   ;;  %v108_v1 = vld [vmem:[#allocation2 + $0x8] sm:$0xff]  ;;  %v40_v2 = vld [vmem:[%s215_s2] sm:$0xff]  ;;  %vm58_vm0 = vcmask 261120  }
   0x7   :  { %114 = vset.pattern.permute.xlu0 %v171_v0  ;;  %68 = vmatpush.bf16.msra.mxu0 %v108_v1  ;;  %v107_v3 = vld [vmem:[#allocation2] sm:$0xff]  ;;  %s172_s27 = smov [#allocation5]   ;;  %s88_s30 = sshll.u32 %s217_s4, 4  ;;  %s89_s30 = int_to_ptr.hbm [resolvable:$true] %s88_s30 }
   0x8   :  { %43 = vperm.xlu0 %114, %v40_v2   ;;  %v35_v4 = vld [vmem:[%s213_s0] sm:$0xf]  ;;  %s86_s28 = sshll.u32 %s172_s27, 4  ;;  %s87_s28 = int_to_ptr.vmem [resolvable:$true] %s86_s28 }
   0x9   :  { %v115_v6 = vld [vmem:[%s216_s3] ss:$0 sm:$0xff] }
   0xb   :  { %69 = vmatpush.bf16.msra.mxu0 %v107_v3 }
   0xe   :  { %106 = vmatmul.msk.bf16.vlgmr.msra.gmra.mxu0 %vm58_vm0, %v35_v4 }
  0x7a   :  { %v44_v5 = vpop.permute.xlu0 %43 }
  0x8b   :  { %v71_v7 = vpop.f32.mrf.mxu0 }
  0x8c   :  { %v72_v8 = vadd.f32 %v71_v7, %v44_v5 }
  0x8e   :  { %v79_v9 = vadd.f32 %v115_v6, %v72_v8 }
  0x90   :  { %80 = vst [vmem:[#allocation5] sm:$0xff] %v79_v9 }
  0x91   :  { %91 = dma.vmem_to_hbm [thread:$0]  %s87_s28, 128, %s89_s30, [#allocation4]  }
  0x93   :  { %v73_v10 = vpop.f32.mrf.mxu0 }
  0x94   :  { %166 = dma.done.wait [#allocation4], 128  }
  0x95   :  { %167 = vsyncadd [#allocation4], 4294967168 }
  0x96   :  { %96 = vsyncpa [#allocation3], 1 }
  0x97   :  { %97 = vsyncpa [#allocation4], 1 }

</bundles_post_ra>
